<compile_context>
chip_gen: v7x
topology: tpu7x:2x2x1
jax: 0.10.0
libtpu: 0.0.40
codegen_flags: <defaults>
</compile_context>

<pallas_src>
import numpy as np
import jax
import jax.numpy as jnp
from jax import lax
from jax.experimental import pallas as pl
from jax.experimental.pallas import tpu as pltpu


# ----------------------------------------------------------------------------
# Plain-JAX glue: sampling / grouping (data-dependent gathers & sorts)
# ----------------------------------------------------------------------------
def square_distance(src, dst):
    # src [B,N,C], dst [B,M,C] -> [B,N,M]
    dist = -2.0 * jnp.matmul(src, jnp.swapaxes(dst, 1, 2))
    dist = dist + jnp.sum(src ** 2, -1)[:, :, None]
    dist = dist + jnp.sum(dst ** 2, -1)[:, None, :]
    return dist


def index_points(points, idx):
    # points [B,N,C], idx [B,...] -> [B,...,C]
    return jax.vmap(lambda p, i: p[i])(points, idx)


def gather_channels_first(points_cf, idx):
    # points_cf [B,C,N], idx [B,...] -> [B,C,...]  (no channel transpose needed)
    return jax.vmap(lambda p, i: p[:, i])(points_cf, idx)


def farthest_point_sample(xyz, npoint):
    # xyz [B,N,3] -> [B,npoint] indices
    B, N, _ = xyz.shape
    batch_idx = jnp.arange(B)

    # TODO(synk): torch uses randint for the initial farthest point; we use a
    # deterministic start index 0 for reproducibility.
    def body(i, state):
        distance, farthest, centroids = state
        centroids = centroids.at[:, i].set(farthest)
        centroid = xyz[batch_idx, farthest][:, None, :]          # [B,1,3]
        dist = jnp.sum((xyz - centroid) ** 2, -1)
        distance = jnp.minimum(distance, dist)
        farthest = jnp.argmax(distance, -1).astype(jnp.int32)
        return distance, farthest, centroids

    distance = jnp.full((B, N), 1e10, jnp.float32)
    farthest = jnp.zeros((B,), jnp.int32)
    centroids = jnp.zeros((B, npoint), jnp.int32)
    _, _, centroids = lax.fori_loop(0, npoint, body,
                                    (distance, farthest, centroids))
    return centroids


def query_ball_point(radius, nsample, xyz, new_xyz):
    # xyz [B,N,3], new_xyz [B,S,3] -> [B,S,nsample] indices
    B, N, _ = xyz.shape
    S = new_xyz.shape[1]
    sqrdists = square_distance(new_xyz, xyz)                     # [B,S,N]
    group_idx = jnp.broadcast_to(jnp.arange(N, dtype=jnp.int32), (B, S, N))
    group_idx = jnp.where(sqrdists > radius ** 2, N, group_idx)
    group_idx = jnp.sort(group_idx, axis=-1)[:, :, :nsample]
    group_first = jnp.broadcast_to(group_idx[:, :, :1], group_idx.shape)
    group_idx = jnp.where(group_idx == N, group_first, group_idx)
    return group_idx


# ----------------------------------------------------------------------------
# Pallas kernel: fused (1x1 conv [BN folded] + ReLU) x L  +  max over K
# Input block: (1, Cin, Kc*S) bf16, flat index m = k*S + s (S on lanes).
# Grid: (B, K // Kc).  Max over K accumulates in the resident output block.
# ----------------------------------------------------------------------------
def _make_msg_kernel(num_layers, k_chunk, s_out):
    def kernel(x_ref, *refs):
        out_ref = refs[-1]
        prm = refs[:-1]                               # (w_bf16, bias_f32) per layer
        kc = pl.program_id(1)

        @pl.when(kc == 0)
        def _():
            out_ref[...] = jnp.full(out_ref.shape, -jnp.inf, out_ref.dtype)

        h = x_ref[0]                                  # (Cin, Kc*S) bf16
        for j in range(num_layers):
            w = prm[2 * j][...]                       # (Cout_j, Cin_j) bf16
            b = prm[2 * j + 1][...]                   # (Cout_j, 1)    f32
            hf = jnp.dot(w, h, preferred_element_type=jnp.float32)   # (Cout, Kc*S)
            hf = jnp.maximum(hf + b, 0.0)
            # TODO(synk): on v6e/v7x a bf16 bias+relu epilogue halves VALU work;
            # kept f32 for v5e portability and tighter reference match.
            h = hf.astype(jnp.bfloat16) if j + 1 < num_layers else hf

        # max over the Kc lane-blocks (each of width S) of the final result
        m = h[:, 0:s_out]
        for k in range(1, k_chunk):
            m = jnp.maximum(m, h[:, k * s_out:(k + 1) * s_out])
        out_ref[0] = jnp.maximum(out_ref[0], m)
    return kernel


def _pick_k_chunk(K, S, cin, cout_max, in_budget=2 << 20, mid_budget=8 << 20):
    # Largest divisor Kc of K such that the streamed bf16 input chunk and the
    # largest f32 intermediate stay within budget, and the block's lane width
    # (Kc*S) is 128-aligned (or the full K*S extent, which is always legal).
    legal = [d for d in range(1, K + 1)
             if K % d == 0 and (d == K or (d * S) % 128 == 0)]
    fitting = [d for d in legal
               if cin * d * S * 2 <= in_budget and cout_max * d * S * 4 <= mid_budget]
    return max(fitting) if fitting else min(legal)


def mlp_conv_bn_relu_max(grouped_flat, layer_params, K, S):
    """grouped_flat: [B, Cin, K*S] bf16 (flat index m = k*S + s).
    layer_params:  list of (w_bf16 [Cout, Cin], bias_f32 [Cout, 1]).
    Returns [B, Cout_last, S] float32 (max over K fused in-kernel)."""
    B, Cin, M = grouped_flat.shape
    assert M == K * S
    n_layers = len(layer_params)
    c_out = int(layer_params[-1][0].shape[0])
    cout_max = max(int(w.shape[0]) for w, _ in layer_params)

    Kc = _pick_k_chunk(K, S, Cin, cout_max)
    n_kc = K // Kc
    Mc = Kc * S

    kernel = _make_msg_kernel(n_layers, Kc, S)

    in_specs = [pl.BlockSpec((1, Cin, Mc), lambda b, kc: (b, 0, kc))]
    args = [grouped_flat]
    for (w, bias) in layer_params:
        in_specs.append(pl.BlockSpec(w.shape, lambda b, kc: (0, 0)))
        in_specs.append(pl.BlockSpec(bias.shape, lambda b, kc: (0, 0)))
        args.extend([w, bias])

    flops = 2 * B * K * S * sum(int(w.shape[0]) * int(w.shape[1])
                                for w, _ in layer_params)
    bytes_accessed = (int(grouped_flat.size) * 2            # bf16 grouped tensor
                      + B * c_out * S * 4                    # f32 output
                      + sum(int(w.size) * 2 + int(bb.size) * 4
                            for w, bb in layer_params))

    return pl.pallas_call(
        kernel,
        out_shape=jax.ShapeDtypeStruct((B, c_out, S), jnp.float32),
        grid=(B, n_kc),
        in_specs=in_specs,
        out_specs=pl.BlockSpec((1, c_out, S), lambda b, kc: (b, 0, 0)),
        compiler_params=pltpu.CompilerParams(
            dimension_semantics=("parallel", "arbitrary"),
            vmem_limit_bytes=32 * 1024 * 1024),
        cost_estimate=pl.CostEstimate(
            flops=flops, transcendentals=0, bytes_accessed=bytes_accessed),
    )(*args)


def _reference_mlp_max(grouped_cf, layers_f32):
    # grouped_cf [B, Cin, K, S] f32; layers: list of (w [Cout,Cin], bias [Cout,1])
    h = grouped_cf
    for w, bias in layers_f32:
        h = jnp.einsum('oc,bcks->boks', w, h,
                       precision=jax.lax.Precision.HIGHEST)
        h = jnp.maximum(h + bias.reshape(1, -1, 1, 1), 0.0)
    return jnp.max(h, axis=2)                                 # [B, Cout, S]


# ----------------------------------------------------------------------------
# Module
# ----------------------------------------------------------------------------
class PointNetSetAbstractionMsgPallas:
    def __init__(self, npoint, radius_list, nsample_list, in_channel, mlp_list, key):
        self.npoint = npoint
        self.radius_list = radius_list
        self.nsample_list = nsample_list
        eps = 1e-5
        self.kernel_params = []   # bf16 folded weights + f32 bias (kernel path)
        self.ref_params = []      # f32 folded weights + f32 bias (reference path)
        for mlp in mlp_list:
            last = in_channel + 3
            klayers, rlayers = [], []
            for out_ch in mlp:
                key, k1, k2, k3, k4 = jax.random.split(key, 5)
                w = (jax.random.normal(k1, (out_ch, last), jnp.float32)
                     / np.sqrt(last)).astype(jnp.float32)      # Conv2d 1x1 weight [Cout,Cin]
                b = 0.05 * jax.random.normal(k2, (out_ch,), jnp.float32)   # Conv2d bias
                gamma = 1.0 + 0.1 * jax.random.normal(k3, (out_ch,), jnp.float32)
                beta = 0.1 * jax.random.normal(k4, (out_ch,), jnp.float32)
                rmean = jnp.zeros((out_ch,), jnp.float32)
                rvar = jnp.ones((out_ch,), jnp.float32)
                # TODO(synk): BatchNorm implemented in eval mode (running stats).
                # Folded into the conv:  y = (Wx + b)*s + t = (s*W)x + (b*s + t)
                s = gamma / jnp.sqrt(rvar + eps)
                t = beta - rmean * s
                w_fold = w * s[:, None]                       # [Cout, Cin]
                bias_fold = (b * s + t)[:, None]              # [Cout, 1]
                rlayers.append((w_fold, bias_fold))
                klayers.append((w_fold.astype(jnp.bfloat16), bias_fold))
                last = out_ch
            self.kernel_params.append(klayers)
            self.ref_params.append(rlayers)

    def _forward(self, xyz, points, use_kernel=True):
        # xyz: [B, 3, N], points: [B, D, N]  (channels-first, as in the PyTorch module)
        B = xyz.shape[0]
        S = self.npoint
        xyz_t = jnp.transpose(xyz, (0, 2, 1))                 # [B,N,3] (small; FPS / ball query only)
        new_xyz = index_points(xyz_t, farthest_point_sample(xyz_t, S))   # [B,S,3]
        new_xyz_cf = jnp.transpose(new_xyz, (0, 2, 1))        # [B,3,S]

        new_points_list = []
        for i, radius in enumerate(self.radius_list):
            K = self.nsample_list[i]
            group_idx = query_ball_point(radius, K, xyz_t, new_xyz)       # [B,S,K]
            idx_ks = jnp.transpose(group_idx, (0, 2, 1))                  # [B,K,S] (tiny int32)
            # Channels-first gather: the K-expanded tensor is born as [B,C,K,S];
            # no layout transpose of the big tensor, centering fuses in.
            grouped_xyz = (gather_channels_first(xyz, idx_ks)
                           - new_xyz_cf[:, :, None, :])                   # [B,3,K,S]
            if points is not None:
                grouped = jnp.concatenate(
                    [gather_channels_first(points, idx_ks), grouped_xyz], axis=1)
            else:
                grouped = grouped_xyz                                     # [B,Cin,K,S]
            # TODO(synk): the K-expanded gather is still materialized in HBM by XLA;
            # moving it in-kernel (PrefetchScalarGridSpec(group_idx) + manual DMA from
            # a pl.ANY-resident [B,C,N] input) would remove that HBM round trip too.
            if use_kernel:
                Cin = grouped.shape[1]
                g = grouped.reshape(B, Cin, K * S).astype(jnp.bfloat16)   # flat m = k*S + s
                new_points = mlp_conv_bn_relu_max(g, self.kernel_params[i], K, S)
            else:
                new_points = _reference_mlp_max(grouped.astype(jnp.float32),
                                                self.ref_params[i])       # [B,Cout,S]
            new_points_list.append(new_points)

        return new_xyz_cf, jnp.concatenate(new_points_list, axis=1)       # [B,3,S], [B,sum(Cout),S]

    def __call__(self, xyz, points):
        return self._forward(xyz, points, use_kernel=True)

    def reference(self, xyz, points):
        return self._forward(xyz, points, use_kernel=False)


# ----------------------------------------------------------------------------
if __name__ == "__main__":
    key = jax.random.PRNGKey(0)
    kx, kp, kw = jax.random.split(key, 3)

    # Small shapes consistent with the module's forward:
    B, N = 2, 32            # batch, num points
    D = 4                   # point-feature channels (in_channel)
    npoint = 8
    radius_list = [0.3, 0.6]
    nsample_list = [8, 16]
    mlp_list = [[16, 32], [16, 32]]

    xyz = jax.random.uniform(kx, (B, 3, N), jnp.float32)          # [B,3,N]
    points = jax.random.normal(kp, (B, D, N), jnp.float32)        # [B,D,N]

    module = PointNetSetAbstractionMsgPallas(
        npoint, radius_list, nsample_list, D, mlp_list, kw)

    new_xyz, new_points = module(xyz, points)
    jax.block_until_ready((new_xyz, new_points))

    # sanity check against plain-JAX f32 reference of the fused hot path
    ref_xyz, ref_points = module.reference(xyz, points)
    jax.block_until_ready((ref_xyz, ref_points))
    assert new_xyz.shape == (B, 3, npoint)
    assert new_points.shape == (B, sum(m[-1] for m in mlp_list), npoint)
    np.testing.assert_allclose(np.asarray(new_xyz), np.asarray(ref_xyz),
                               rtol=1e-2, atol=1e-2)
    # kernel uses bf16 matmul inputs (f32 accumulate) -> slightly looser tol
    np.testing.assert_allclose(np.asarray(new_points), np.asarray(ref_points),
                               rtol=2e-2, atol=2e-2)

    print("KERNEL_OK")
</pallas_src>

<mosaic_0001>
module attributes {stable_mosaic.version = 11 : i64} {
  func.func @kernel(%arg0: i32, %arg1: i32, %arg2: memref<1x7x64xbf16, #tpu.memory_space<vmem>>, %arg3: memref<16x7xbf16, #tpu.memory_space<vmem>>, %arg4: memref<16x1xf32, #tpu.memory_space<vmem>>, %arg5: memref<32x16xbf16, #tpu.memory_space<vmem>>, %arg6: memref<32x1xf32, #tpu.memory_space<vmem>>, %arg7: memref<1x32x8xf32, #tpu.memory_space<vmem>>) attributes {dimension_semantics = [#tpu.dimension_semantics<parallel>, #tpu.dimension_semantics<arbitrary>], iteration_bounds = array<i64: 2, 1>, scalar_prefetch = 0 : i64, scratch_operands = 0 : i64, tpu.core_type = #tpu.core_type<tc>, window_params = [{transform_indices = @transform_0, window_bounds = array<i64: 1, 7, 64>}, {pipeline_mode = #tpu.pipeline_mode<synchronous>, transform_indices = @transform_1, window_bounds = array<i64: 16, 7>}, {pipeline_mode = #tpu.pipeline_mode<synchronous>, transform_indices = @transform_2, window_bounds = array<i64: 16, 1>}, {pipeline_mode = #tpu.pipeline_mode<synchronous>, transform_indices = @transform_3, window_bounds = array<i64: 32, 16>}, {pipeline_mode = #tpu.pipeline_mode<synchronous>, transform_indices = @transform_4, window_bounds = array<i64: 32, 1>}, {transform_indices = @transform_5, window_bounds = array<i64: 1, 32, 8>}]} {
    %c0_i32 = arith.constant 0 : i32
    %0 = arith.cmpi eq, %arg1, %c0_i32 : i32
    %1 = arith.extui %0 : i1 to i32
    %c0_i32_0 = arith.constant 0 : i32
    %2 = arith.cmpi ne, %1, %c0_i32_0 : i32
    scf.if %2 {
      %cst_20 = arith.constant 0xFF800000 : f32
      %41 = vector.broadcast %cst_20 : f32 to vector<1x32x8xf32>
      %c0_21 = arith.constant 0 : index
      %c0_22 = arith.constant 0 : index
      %c0_23 = arith.constant 0 : index
      %42 = vector.load %arg7[%c0_21, %c0_22, %c0_23] : memref<1x32x8xf32, #tpu.memory_space<vmem>>, vector<1x32x8xf32>
      tpu.vector_store %arg7[%c0_21, %c0_22, %c0_23], %41 {strides = array<i32>} : memref<1x32x8xf32, #tpu.memory_space<vmem>>, vector<1x32x8xf32>,
    } else {
    }
    %c0 = arith.constant 0 : index
    %c0_1 = arith.constant 0 : index
    %c0_2 = arith.constant 0 : index
    %3 = vector.load %arg2[%c0, %c0_1, %c0_2] : memref<1x7x64xbf16, #tpu.memory_space<vmem>>, vector<1x7x64xbf16>
    %4 = vector.shape_cast %3 : vector<1x7x64xbf16> to vector<7x64xbf16>
    %c0_3 = arith.constant 0 : index
    %c0_4 = arith.constant 0 : index
    %5 = vector.load %arg3[%c0_3, %c0_4] : memref<16x7xbf16, #tpu.memory_space<vmem>>, vector<16x7xbf16>
    %c0_5 = arith.constant 0 : index
    %c0_6 = arith.constant 0 : index
    %6 = vector.load %arg4[%c0_5, %c0_6] : memref<16x1xf32, #tpu.memory_space<vmem>>, vector<16x1xf32>
    %cst = arith.constant dense<0.000000e+00> : vector<16x64xf32>
    %7 = tpu.matmul %5, %4, %cst {dimension_numbers = #tpu.dot_dimension_numbers<[1], [0], [0], [1], [0, 0, 1, 1], [], []>} : vector<16x7xbf16>, vector<7x64xbf16>, vector<16x64xf32> -> vector<16x64xf32>
    %8 = vector.broadcast %6 : vector<16x1xf32> to vector<16x64xf32>
    %9 = arith.addf %7, %8 : vector<16x64xf32>
    %cst_7 = arith.constant 0.000000e+00 : f32
    %10 = vector.broadcast %cst_7 : f32 to vector<16x64xf32>
    %11 = arith.maximumf %9, %10 : vector<16x64xf32>
    %12 = arith.truncf %11 : vector<16x64xf32> to vector<16x64xbf16>
    %c0_8 = arith.constant 0 : index
    %c0_9 = arith.constant 0 : index
    %13 = vector.load %arg5[%c0_8, %c0_9] : memref<32x16xbf16, #tpu.memory_space<vmem>>, vector<32x16xbf16>
    %c0_10 = arith.constant 0 : index
    %c0_11 = arith.constant 0 : index
    %14 = vector.load %arg6[%c0_10, %c0_11] : memref<32x1xf32, #tpu.memory_space<vmem>>, vector<32x1xf32>
    %cst_12 = arith.constant dense<0.000000e+00> : vector<32x64xf32>
    %15 = tpu.matmul %13, %12, %cst_12 {dimension_numbers = #tpu.dot_dimension_numbers<[1], [0], [0], [1], [0, 0, 1, 1], [], []>} : vector<32x16xbf16>, vector<16x64xbf16>, vector<32x64xf32> -> vector<32x64xf32>
    %16 = vector.broadcast %14 : vector<32x1xf32> to vector<32x64xf32>
    %17 = arith.addf %15, %16 : vector<32x64xf32>
    %cst_13 = arith.constant 0.000000e+00 : f32
    %18 = vector.broadcast %cst_13 : f32 to vector<32x64xf32>
    %19 = arith.maximumf %17, %18 : vector<32x64xf32>
    %20 = vector.extract_strided_slice %19 {offsets = [0, 0], sizes = [32, 8], strides = [1, 1]} : vector<32x64xf32> to vector<32x8xf32>
    %21 = vector.extract_strided_slice %19 {offsets = [0, 8], sizes = [32, 8], strides = [1, 1]} : vector<32x64xf32> to vector<32x8xf32>
    %22 = arith.maximumf %20, %21 : vector<32x8xf32>
    %23 = vector.extract_strided_slice %19 {offsets = [0, 16], sizes = [32, 8], strides = [1, 1]} : vector<32x64xf32> to vector<32x8xf32>
    %24 = arith.maximumf %22, %23 : vector<32x8xf32>
    %25 = vector.extract_strided_slice %19 {offsets = [0, 24], sizes = [32, 8], strides = [1, 1]} : vector<32x64xf32> to vector<32x8xf32>
    %26 = arith.maximumf %24, %25 : vector<32x8xf32>
    %27 = vector.extract_strided_slice %19 {offsets = [0, 32], sizes = [32, 8], strides = [1, 1]} : vector<32x64xf32> to vector<32x8xf32>
    %28 = arith.maximumf %26, %27 : vector<32x8xf32>
    %29 = vector.extract_strided_slice %19 {offsets = [0, 40], sizes = [32, 8], strides = [1, 1]} : vector<32x64xf32> to vector<32x8xf32>
    %30 = arith.maximumf %28, %29 : vector<32x8xf32>
    %31 = vector.extract_strided_slice %19 {offsets = [0, 48], sizes = [32, 8], strides = [1, 1]} : vector<32x64xf32> to vector<32x8xf32>
    %32 = arith.maximumf %30, %31 : vector<32x8xf32>
    %33 = vector.extract_strided_slice %19 {offsets = [0, 56], sizes = [32, 8], strides = [1, 1]} : vector<32x64xf32> to vector<32x8xf32>
    %34 = arith.maximumf %32, %33 : vector<32x8xf32>
    %c0_14 = arith.constant 0 : index
    %c0_15 = arith.constant 0 : index
    %c0_16 = arith.constant 0 : index
    %35 = vector.load %arg7[%c0_14, %c0_15, %c0_16] : memref<1x32x8xf32, #tpu.memory_space<vmem>>, vector<1x32x8xf32>
    %36 = vector.shape_cast %35 : vector<1x32x8xf32> to vector<32x8xf32>
    %37 = arith.maximumf %36, %34 : vector<32x8xf32>
    %c0_17 = arith.constant 0 : index
    %c0_18 = arith.constant 0 : index
    %c0_19 = arith.constant 0 : index
    %38 = vector.load %arg7[%c0_17, %c0_18, %c0_19] : memref<1x32x8xf32, #tpu.memory_space<vmem>>, vector<1x32x8xf32>
    %39 = vector.shape_cast %38 : vector<1x32x8xf32> to vector<32x8xf32>
    %40 = vector.shape_cast %37 : vector<32x8xf32> to vector<1x32x8xf32>
    tpu.vector_store %arg7[%c0_17, %c0_18, %c0_19], %40 {strides = array<i32>} : memref<1x32x8xf32, #tpu.memory_space<vmem>>, vector<1x32x8xf32>,
    return
  }
  func.func @transform_0(%arg0: i32, %arg1: i32) -> (i32, i32, i32) {
    %c0_i32 = arith.constant 0 : i32
    %c0_i32_0 = arith.constant 0 : i32
    return %arg0, %c0_i32, %arg1 : i32, i32, i32
  }
  func.func @transform_1(%arg0: i32, %arg1: i32) -> (i32, i32) {
    %c0_i32 = arith.constant 0 : i32
    %c0_i32_0 = arith.constant 0 : i32
    %c0_i32_1 = arith.constant 0 : i32
    return %c0_i32, %c0_i32_0 : i32, i32
  }
  func.func @transform_2(%arg0: i32, %arg1: i32) -> (i32, i32) {
    %c0_i32 = arith.constant 0 : i32
    %c0_i32_0 = arith.constant 0 : i32
    %c0_i32_1 = arith.constant 0 : i32
    return %c0_i32, %c0_i32_0 : i32, i32
  }
  func.func @transform_3(%arg0: i32, %arg1: i32) -> (i32, i32) {
    %c0_i32 = arith.constant 0 : i32
    %c0_i32_0 = arith.constant 0 : i32
    %c0_i32_1 = arith.constant 0 : i32
    return %c0_i32, %c0_i32_0 : i32, i32
  }
  func.func @transform_4(%arg0: i32, %arg1: i32) -> (i32, i32) {
    %c0_i32 = arith.constant 0 : i32
    %c0_i32_0 = arith.constant 0 : i32
    %c0_i32_1 = arith.constant 0 : i32
    return %c0_i32, %c0_i32_0 : i32, i32
  }
  func.func @transform_5(%arg0: i32, %arg1: i32) -> (i32, i32, i32) {
    %c0_i32 = arith.constant 0 : i32
    %c0_i32_0 = arith.constant 0 : i32
    %c0_i32_1 = arith.constant 0 : i32
    return %arg0, %c0_i32, %c0_i32_0 : i32, i32, i32
  }
}

</mosaic_0001>

<bundles_post_ra>
// kernel: tpu_custom_call.1
= control target key start
LH: loop header
LB: loop body
LE: loop exit
PB: predicated region body
PF: predicated region fallthrough
CT: control target
= control target key end

     0   :  { %s764_s18 = smov 0   ;;  %s766_s19 = smov 0   ;;  %s876_s0 = inlined_call_operand.vmem [shape: bf16[2,7,64], index: 0, kind: input, shape index: {}]   ;;  %s877_s1 = inlined_call_operand.vmem [shape: bf16[16,7], index: 1, kind: input, shape index: {}]   ;;  %s878_s2 = inlined_call_operand.vmem [shape: f32[16,1], index: 2, kind: input, shape index: {}]   ;;  %s879_s3 = inlined_call_operand.vmem [shape: bf16[32,16], index: 3, kind: input, shape index: {}]   ;;  %s880_s4 = inlined_call_operand.vmem [shape: f32[32,1], index: 4, kind: input, shape index: {}]   ;;  %s881_s5 = inlined_call_operand.vmem [shape: f32[2,32,8], index: 5, kind: output, shape index: {}]  }
   0x1   :  { %s768_s20 = smov 0  }
   0x2 LB: > { %s27_s21 = sadd.s32 1, %s716_s19  ;;  %p627_p0 = scmp.ge.s32.totalorder %s720_s20, 1  ;;  %s720_s20 = sphi %s768_s20, %s15_s20   ;;  %s716_s19 = sphi %s766_s19, %s883_s19   ;;  %s712_s18 = sphi %s764_s18, %s882_s18  }
   0x3   : > { %p29_p1 = scmp.ge.s32.totalorder %s27_s21, 2  ;;  %p203_p2 = scmp.lt.s32.totalorder %s720_s20, 3 }
   0x5   : > { %s885_s21 = smov (%p29_p1, %s27_s21), 0  ;;  %p204_p3 = pnand %p627_p0, %p203_p2 }
   0x6   : > { %p233_p4 = scmp.lt.s32.totalorder (!%p204_p3), %s712_s18, 1  ;;  %vm279_vm0 = vcmask (!%p204_p3), 1042432   ;;  %vm280_vm1 = vcmask (!%p204_p3), 1043456   ;;  %v722_v0 = vmov (!%p204_p3), 0.0   ;;  %v723_v1 = vmov (!%p204_p3), 65535   ;;  %v258_v3 = vld [vmem:[%s878_s2] sm:$0xff] (!%p204_p3) }
   0x7   : > { %207 = sbr.rel (%p204_p3) target bundleno = 637 (0x27d), region = 40  ;;  %645 = vmatprep.subr.bf16.mxu0 (!%p204_p3), %v722_v0  ;;  %v281_v2 = vsel (!%p204_p3), %vm279_vm0, 4294967295, %v723_v1  ;;  %vm724_vm2 = vmmov (!%p204_p3), 0   ;;  %v725_v4 = vmov (!%p204_p3), 0   ;;  %v259_v6 = vld [vmem:[%s878_s2 + $0x8] sm:$0xff] (!%p204_p3)  ;;  %v695_v9 = vld [vmem:[%s877_s1] sm:$0xff] (!%p204_p3)  }
   0x8   : > { %647 = vmatprep.mubr.msk.bf16.mxu0 (!%p204_p3), %vm724_vm2, %v722_v0  ;;  %693 = vset.pattern.permute.xlu0 (!%p204_p3), %v725_v4  ;;  %v282_v5 = vsel (!%p204_p3), %vm280_vm1, %v281_v2, 0  ;;  %vm275_vm3 = vcmask (!%p204_p3), 56320   ;;  %v336_v10 = vld [vmem:[%s880_s4 + $0x10] sm:$0xff] (!%p204_p3)  ;;  %v696_v11 = vld [vmem:[%s879_s3] sm:$0xff] (!%p204_p3)   ;;  %vm368_vm4 = vcmask (!%p204_p3), 130048   ;;  %v335_v13 = vld [vmem:[%s880_s4 + $0x8] sm:$0xff] (!%p204_p3) }
   0x9   : > { %694 = vset.pattern.permute.xlu1 (!%p204_p3), %v725_v4  ;;  %262 = vperm.xlu0 (!%p204_p3), %693, %v258_v3   ;;  %v334_v12 = vld [vmem:[%s880_s4] sm:$0xff] (!%p204_p3)  ;;  %v337_v14 = vld [vmem:[%s880_s4 + $0x18] sm:$0xff] (!%p204_p3)  ;;  %v697_v26 = vld [vmem:[%s879_s3 + $0x8] sm:$0xff] (!%p204_p3)   ;;  %s726_s23 = smov (!%p204_p3), 120   ;;  %s728_s25 = smov (!%p204_p3), 104   ;;  %vm250_vm5 = vcmask (!%p204_p3), 64512  }
   0xa   : > { %653 = vmatprep.mubr.msk.bf16.mxu1 (!%p204_p3), %vm368_vm4, %v696_v11  ;;  %340 = vperm.xlu1 (!%p204_p3), %694, %v334_v12   ;;  %s729_s26 = smov (!%p204_p3), 96   ;;  %s731_s28 = smov (!%p204_p3), 80   ;;  %v732_v43 = vmov (!%p204_p3), -inf  }
   0xd   : > { %267 = vperm.xlu0 (!%p204_p3), %693, %v259_v6  }
   0xe   : > { %s887_s18 = smov (!%p233_p4, %s712_s18), 1  ;;  %345 = vperm.xlu1 %694, %v335_v13  }
   0xf   : > { %s628_s24 = sshll.u32 %s887_s18, 2  ;;  %s639_s29 = sshll.u32 %s887_s18, 5 }
  0x10   : > { %s239_s27 = scalar_lea.vmem %s876_s0, %s628_s24  ;;  %s727_s24 = smov 112  }
  0x11   : > { %v255_v7 = vld [vmem:[%s239_s27] sm:$0xf]  ;;  %350 = vperm.xlu0 %693, %v336_v10   ;;  %s730_s27 = smov 88   ;;  %s839_s7 = scalar_lea.vmem %s881_s5, %s639_s29 }
  0x12   : > { %v284_v8 = vand.u32 %v282_v5, %v255_v7  ;;  %355 = vperm.xlu1 %694, %v337_v14   ;;  %251 = vst.msk [vmem:[%s839_s7] sm:$0xff] %vm250_vm5, %v732_v43  ;;  %252 = vst.msk [vmem:[%s839_s7 + $0x8] sm:$0xff] %vm250_vm5, %v732_v43  ;;  %s733_s18 = smov 72  }
  0x13   : > { %253 = vst.msk [vmem:[%s839_s7 + $0x10] sm:$0xff] %vm250_vm5, %v732_v43  ;;  %254 = vst.msk [vmem:[%s839_s7 + $0x18] sm:$0xff] %vm250_vm5, %v732_v43 }
  0x14   : > { %646 = vmatpush3.bf16.msra.mxu0 %v284_v8 }
  0x17   : > { %648 = vmatmul.mubr.msk.bf16.vlgmr.msra.gmra.mrb[0].mxu0 %vm275_vm3, %v695_v9 }
  0x88   : > { %v263_v15 = vpop.permute.xlu0 %262 }
  0x89   : > { %v341_v27 = vpop.permute.xlu1 %340 }
  0x8c   : > { %v268_v19 = vpop.permute.xlu0 %267 }
  0x8d   : > { %v346_v28 = vpop.permute.xlu1 %345 }
  0x90   : > { %v351_v29 = vpop.permute.xlu0 %350 }
  0x91   : > { %v356_v33 = vpop.permute.xlu1 %355 }
  0xea   : > { %v320_v16 = vpop.f32.mrb[0].mxu0 }
  0xeb   : > { %v321_v17 = vadd.f32 %v320_v16, %v263_v15  ;;  %v649_v18 = vpop.f32.mrb[1].mxu0 }
  0xec   : > { %v323_v20 = vpop.f32.mrb[2].mxu0 }
  0xed   : > { %v324_v21 = vadd.f32 %v323_v20, %v268_v19  ;;  %v650_v22 = vpop.f32.mrb[3].mxu0  ;;  %v327_v23 = vmax.f32 %v321_v17, 0.0 }
  0xee   : > { %v544_v22 = vld [vmem:[%s839_s7] sm:$0xff] }
  0xef   : > { %v328_v24 = vmax.f32 %v324_v21, 0.0 }
  0xf1   : > { %v329_v25 = vpack.c.bf16 %v328_v24, %v327_v23 }
  0xf3   : > { %651 = vmatprep.subr.bf16.mxu1 %v329_v25 }
  0xf4   : > { %652 = vmatpush3.bf16.msra.mxu1 %v329_v25 }
  0xf7   : > { %654 = vmatmul.mubr.msk.bf16.vlgmr.msra.gmra.mrb[0].mxu1 %vm368_vm4, %v697_v26 }
 0x1ca   : > { %v655_v30 = vpop.f32.mrb[0].mxu1 }
 0x1cb   : > { %v418_v31 = vadd.f32 %v655_v30, %v351_v29  ;;  %v409_v32 = vpop.f32.mrb[1].mxu1 }
 0x1cc   : > { %v656_v34 = vpop.f32.mrb[2].mxu1  ;;  %v410_v39 = vadd.f32 %v409_v32, %v341_v27 }
 0x1cd   : > { %v817_v35 = vmax.f32 %v418_v31, 0.0  ;;  %v421_v36 = vadd.f32 %v656_v34, %v356_v33  ;;  %v412_v37 = vpop.f32.mrb[3].mxu1  ;;  %v546_v34 = vld [vmem:[%s839_s7 + $0x10] sm:$0xff] }
 0x1ce   : > { %v413_v40 = vadd.f32 %v412_v37, %v346_v28  ;;  %v424_v41 = vmax.f32 %v410_v39, 0.0  ;;  %v545_v28 = vld [vmem:[%s839_s7 + $0x8] sm:$0xff]  ;;  %v547_v39 = vld [vmem:[%s839_s7 + $0x18] sm:$0xff] }
 0x1cf   : > { %v819_v38 = vmax.f32 %v421_v36, 0.0  ;;  %436 = vrot.lane.b32.xlu0 %v817_v35, %s726_s23 }
 0x1d0   : > { %v425_v42 = vmax.f32 %v413_v40, 0.0 }
 0x1d1   : > { %438 = vrot.lane.b32.xlu1 %v819_v38, %s726_s23 }
 0x1d3   : > { %452 = vrot.lane.b32.xlu0 %v817_v35, %s727_s24 }
 0x1d5   : > { %454 = vrot.lane.b32.xlu1 %v819_v38, %s727_s24 }
 0x1d7   : > { %468 = vrot.lane.b32.xlu0 %v817_v35, %s728_s25 }
 0x1d9   : > { %470 = vrot.lane.b32.xlu1 %v819_v38, %s728_s25 }
 0x1db   : > { %484 = vrot.lane.b32.xlu0 %v817_v35, %s729_s26 }
 0x1dd   : > { %486 = vrot.lane.b32.xlu1 %v819_v38, %s729_s26 }
 0x1df   : > { %500 = vrot.lane.b32.xlu0 %v817_v35, %s730_s27 }
 0x1e1   : > { %502 = vrot.lane.b32.xlu1 %v819_v38, %s730_s27 }
 0x1e3   : > { %516 = vrot.lane.b32.xlu0 %v817_v35, %s731_s28 }
 0x1e5   : > { %518 = vrot.lane.b32.xlu1 %v819_v38, %s731_s28 }
 0x1e7   : > { %432 = vrot.lane.b32.xlu0 %v424_v41, %s726_s23 }
 0x1e9   : > { %434 = vrot.lane.b32.xlu1 %v425_v42, %s726_s23 }
 0x1eb   : > { %448 = vrot.lane.b32.xlu0 %v424_v41, %s727_s24 }
 0x1ed   : > { %450 = vrot.lane.b32.xlu1 %v425_v42, %s727_s24 }
 0x1ef   : > { %464 = vrot.lane.b32.xlu0 %v424_v41, %s728_s25 }
 0x1f1   : > { %466 = vrot.lane.b32.xlu1 %v425_v42, %s728_s25 }
 0x1f3   : > { %480 = vrot.lane.b32.xlu0 %v424_v41, %s729_s26 }
 0x1f5   : > { %482 = vrot.lane.b32.xlu1 %v425_v42, %s729_s26 }
 0x1f7   : > { %496 = vrot.lane.b32.xlu0 %v424_v41, %s730_s27 }
 0x1f9   : > { %498 = vrot.lane.b32.xlu1 %v425_v42, %s730_s27 }
 0x1fb   : > { %512 = vrot.lane.b32.xlu0 %v424_v41, %s731_s28 }
 0x1fd   : > { %514 = vrot.lane.b32.xlu1 %v425_v42, %s731_s28 }
 0x1ff   : > { %528 = vrot.lane.b32.xlu0 %v424_v41, %s733_s18 }
 0x201   : > { %530 = vrot.lane.b32.xlu1 %v425_v42, %s733_s18 }
 0x203   : > { %532 = vrot.lane.b32.xlu0 %v817_v35, %s733_s18 }
 0x205   : > { %534 = vrot.lane.b32.xlu1 %v819_v38, %s733_s18 }
 0x241   : > { %v437_v44 = vpop.permute.xlu0 %436 }
 0x242   : > { %v446_v4 = vmax.f32 %v817_v35, %v437_v44 }
 0x243   : > { %v439_v45 = vpop.permute.xlu1 %438 }
 0x244   : > { %v447_v8 = vmax.f32 %v819_v38, %v439_v45 }
 0x245   : > { %v453_v46 = vpop.permute.xlu0 %452 }
 0x246   : > { %v462_v9 = vmax.f32 %v446_v4, %v453_v46 }
 0x247   : > { %v455_v47 = vpop.permute.xlu1 %454 }
 0x248   : > { %v463_v13 = vmax.f32 %v447_v8, %v455_v47 }
 0x249   : > { %v469_v48 = vpop.permute.xlu0 %468 }
 0x24a   : > { %v478_v14 = vmax.f32 %v462_v9, %v469_v48 }
 0x24b   : > { %v471_v49 = vpop.permute.xlu1 %470 }
 0x24c   : > { %v479_v18 = vmax.f32 %v463_v13, %v471_v49 }
 0x24d   : > { %v485_v50 = vpop.permute.xlu0 %484 }
 0x24e   : > { %v494_v19 = vmax.f32 %v478_v14, %v485_v50 }
 0x24f   : > { %v487_v51 = vpop.permute.xlu1 %486 }
 0x250   : > { %v495_v24 = vmax.f32 %v479_v18, %v487_v51 }
 0x251   : > { %v501_v52 = vpop.permute.xlu0 %500 }
 0x252   : > { %v510_v25 = vmax.f32 %v494_v19, %v501_v52 }
 0x253   : > { %v503_v53 = vpop.permute.xlu1 %502 }
 0x254   : > { %v511_v30 = vmax.f32 %v495_v24, %v503_v53 }
 0x255   : > { %v517_v54 = vpop.permute.xlu0 %516 }
 0x256   : > { %v526_v31 = vmax.f32 %v510_v25, %v517_v54 }
 0x257   : > { %v519_v55 = vpop.permute.xlu1 %518 }
 0x258   : > { %v527_v36 = vmax.f32 %v511_v30, %v519_v55 }
 0x259   : > { %v433_v56 = vpop.permute.xlu0 %432 }
 0x25a   : > { %v444_v63 = vmax.f32 %v424_v41, %v433_v56 }
 0x25b   : > { %v435_v57 = vpop.permute.xlu1 %434 }
 0x25c   : > { %v445_v1 = vmax.f32 %v425_v42, %v435_v57 }
 0x25d   : > { %v449_v58 = vpop.permute.xlu0 %448 }
 0x25e   : > { %v460_v2 = vmax.f32 %v444_v63, %v449_v58 }
 0x25f   : > { %v451_v59 = vpop.permute.xlu1 %450 }
 0x260   : > { %v461_v5 = vmax.f32 %v445_v1, %v451_v59 }
 0x261   : > { %v465_v60 = vpop.permute.xlu0 %464 }
 0x262   : > { %v476_v6 = vmax.f32 %v460_v2, %v465_v60 }
 0x263   : > { %v467_v61 = vpop.permute.xlu1 %466 }
 0x264   : > { %v477_v10 = vmax.f32 %v461_v5, %v467_v61 }
 0x265   : > { %v481_v62 = vpop.permute.xlu0 %480 }
 0x266   : > { %v492_v11 = vmax.f32 %v476_v6, %v481_v62 }
 0x267   : > { %v483_v0 = vpop.permute.xlu1 %482 }
 0x268   : > { %v493_v15 = vmax.f32 %v477_v10, %v483_v0 }
 0x269   : > { %v497_v3 = vpop.permute.xlu0 %496 }
 0x26a   : > { %v508_v16 = vmax.f32 %v492_v11, %v497_v3 }
 0x26b   : > { %v499_v7 = vpop.permute.xlu1 %498 }
 0x26c   : > { %v509_v20 = vmax.f32 %v493_v15, %v499_v7 }
 0x26d   : > { %v513_v12 = vpop.permute.xlu0 %512 }
 0x26e   : > { %v524_v21 = vmax.f32 %v508_v16, %v513_v12 }
 0x26f   : > { %v515_v17 = vpop.permute.xlu1 %514 }
 0x270   : > { %v525_v26 = vmax.f32 %v509_v20, %v515_v17 }
 0x271   : > { %v529_v23 = vpop.permute.xlu0 %528 }
 0x272   : > { %v540_v27 = vmax.f32 %v524_v21, %v529_v23 }
 0x273   : > { %v531_v29 = vpop.permute.xlu1 %530 }
 0x274   : > { %v548_v32 = vmax.f32 %v544_v22, %v540_v27  ;;  %v541_v33 = vmax.f32 %v525_v26, %v531_v29 }
 0x275   : > { %v533_v35 = vpop.permute.xlu0 %532 }
 0x276   : > { %553 = vst.msk [vmem:[%s839_s7] sm:$0xff] %vm250_vm5, %v548_v32  ;;  %v549_v37 = vmax.f32 %v545_v28, %v541_v33  ;;  %v542_v38 = vmax.f32 %v526_v31, %v533_v35 }
 0x277   : > { %v535_v40 = vpop.permute.xlu1 %534 }
 0x278   : > { %554 = vst.msk [vmem:[%s839_s7 + $0x8] sm:$0xff] %vm250_vm5, %v549_v37  ;;  %v550_v41 = vmax.f32 %v546_v34, %v542_v38  ;;  %v543_v42 = vmax.f32 %v527_v36, %v535_v40 }
 0x27a   : > { %555 = vst.msk [vmem:[%s839_s7 + $0x10] sm:$0xff] %vm250_vm5, %v550_v41  ;;  %v551_v43 = vmax.f32 %v547_v39, %v543_v42 }
 0x27c   : > { %556 = vst.msk [vmem:[%s839_s7 + $0x18] sm:$0xff] %vm250_vm5, %v551_v43 }
 0x27d PF: > { %s15_s20 = sadd.s32 1, %s720_s20   ;;  %s882_s18 = smov %s716_s19 }
 0x27e   : > { %p12_p5 = scmp.ge.s32.totalorder %s15_s20, 4   ;;  %s883_s19 = smov %s885_s21 }
 0x280   :  { %14 = sbr.rel (!%p12_p5) target bundleno = 2 (0x2), region = 74 }

</bundles_post_ra>
